<compile_context>
chip_gen: v6e
topology: v6e:2x2x1
jax: 0.10.0
libtpu: 0.0.40
codegen_flags: <defaults>
</compile_context>

<pallas_src>
import functools

import jax
import jax.numpy as jnp
from jax.experimental import pallas as pl
from jax.experimental.pallas import tpu as pltpu


# ---------------------------------------------------------------------------
# Kernels (all NCL: x blocks are (Bt, C, T*), channels on sublanes, T on lanes)
# ---------------------------------------------------------------------------
def _fused_kernel(x_ref, w1_ref, b1_ref, w2_ref, b2_ref, o_ref, *, seq_len):
    """Single pass: squeeze + excite MLP + scale on one resident tile."""
    x = x_ref[...]                                                    # (Bt, C, T)
    # Squeeze: mean over T (lane reduce), f32 accumulation without an explicit
    # f32 copy of the tile.
    mean = jnp.sum(x, axis=-1, dtype=jnp.float32) * (1.0 / float(seq_len))
    # Excite MLP: tiny matmuls, FLOPs negligible next to the HBM stream.
    h = jnp.dot(mean, w1_ref[...], preferred_element_type=jnp.float32)
    h = jnp.maximum(h + b1_ref[...], 0.0)                             # (Bt, H)
    e = jnp.dot(h, w2_ref[...], preferred_element_type=jnp.float32)
    e = jax.nn.sigmoid(e + b2_ref[...])                               # (Bt, C)
    # Scale: lane-splat broadcast multiply in x's native dtype.
    o_ref[...] = x * e.astype(x.dtype)[:, :, None]


def _excite_kernel(x_ref, w1_ref, b1_ref, w2_ref, b2_ref, e_ref, acc_ref, *,
                   seq_len, t_tile, mask_tail):
    """Streamed squeeze over tiled T; excite MLP on the last T step."""
    t = pl.program_id(1)

    @pl.when(t == 0)
    def _():
        acc_ref[...] = jnp.zeros_like(acc_ref)

    x = x_ref[...]                                                    # (Bt, C, Tt)
    if mask_tail:   # static: only emitted when T % Tt != 0
        col = jax.lax.broadcasted_iota(jnp.int32, x.shape, dimension=2)
        x = jnp.where(t * t_tile + col < seq_len, x, jnp.zeros_like(x))
    acc_ref[...] += jnp.sum(x, axis=-1, dtype=jnp.float32)

    @pl.when(t == pl.num_programs(1) - 1)
    def _():
        mean = acc_ref[...] * (1.0 / float(seq_len))                  # (Bt, C)
        h = jnp.dot(mean, w1_ref[...], preferred_element_type=jnp.float32)
        h = jnp.maximum(h + b1_ref[...], 0.0)
        e = jnp.dot(h, w2_ref[...], preferred_element_type=jnp.float32)
        e_ref[...] = jax.nn.sigmoid(e + b2_ref[...]).astype(e_ref.dtype)


def _scale_kernel(x_ref, e_ref, o_ref):
    """Broadcast multiply in x's native dtype."""
    e = e_ref[...].astype(x_ref.dtype)                                # (Bt, C)
    o_ref[...] = x_ref[...] * e[:, :, None]


# ---------------------------------------------------------------------------
# Tiling / VMEM-budget helpers
# ---------------------------------------------------------------------------
def _vmem_budget_bytes():
    """Per-kernel VMEM budget.  Conservative 48 MiB unless the device is a
    known 128-MiB-VMEM generation (v5e/v6e); keeps tiles legal on v7x."""
    try:
        kind = jax.devices()[0].device_kind.lower()
    except Exception:
        kind = ""
    if "v5" in kind or "v6" in kind:
        return 96 << 20
    return 48 << 20


def _derive_vmem_limit(block_bytes, weights_bytes):
    # in + out, double-buffered, plus resident weights and a little slack.
    return int(max(32 << 20, 4 * block_bytes + 2 * weights_bytes + (4 << 20)))


# ---------------------------------------------------------------------------
# pallas_call wrappers
# ---------------------------------------------------------------------------
def _fused_call(x, w1, b1, w2, b2, slab_cap, weights_bytes):
    B, C, T = x.shape
    H = w1.shape[1]
    itemsize = jnp.dtype(x.dtype).itemsize
    row_bytes = C * T * itemsize

    target_block = 8 << 20                     # amortize ~0.35 us/step overhead
    bt = max(1, min(B, target_block // row_bytes, slab_cap // row_bytes))
    if B >= 2:
        bt = min(bt, -(-B // 2))               # >= 2 grid steps: megacore + overlap
    bt = int(bt)
    nb = pl.cdiv(B, bt)
    block_bytes = bt * row_bytes

    cost = pl.CostEstimate(
        flops=int(2 * B * T * C + 4 * B * C * H),
        transcendentals=int(B * C),
        bytes_accessed=int(2 * B * T * C * itemsize + weights_bytes),
    )
    return pl.pallas_call(
        functools.partial(_fused_kernel, seq_len=T),
        out_shape=jax.ShapeDtypeStruct((B, C, T), x.dtype),
        grid=(nb,),
        in_specs=[
            pl.BlockSpec((bt, C, T), lambda b: (b, 0, 0)),
            pl.BlockSpec((C, H), lambda b: (0, 0)),
            pl.BlockSpec((1, H), lambda b: (0, 0)),
            pl.BlockSpec((H, C), lambda b: (0, 0)),
            pl.BlockSpec((1, C), lambda b: (0, 0)),
        ],
        out_specs=pl.BlockSpec((bt, C, T), lambda b: (b, 0, 0)),
        compiler_params=pltpu.CompilerParams(
            dimension_semantics=("parallel",),
            vmem_limit_bytes=_derive_vmem_limit(block_bytes, weights_bytes),
        ),
        cost_estimate=cost,
    )(x, w1, b1, w2, b2)


def _two_pass_call(x, w1, b1, w2, b2, weights_bytes):
    B, C, T = x.shape
    H = w1.shape[1]
    itemsize = jnp.dtype(x.dtype).itemsize

    # Batch tile: full B (always legal) or a multiple of 8 so the (Bt, C)
    # excite block keeps a legal (8, 128)-aligned shape (C is always full).
    bt = B if B <= 8 else 8
    # Time tile: multiple of 128 lanes (or full T); tails via cdiv + in-kernel mask.
    if T <= 128:
        tt = T
    else:
        stream_cap = 6 << 20
        tt = (stream_cap // (bt * C * itemsize)) // 128 * 128
        tt = int(max(128, min(tt, (T // 128) * 128)))
    nb, nt = pl.cdiv(B, bt), pl.cdiv(T, tt)
    mask_tail = (T % tt) != 0
    block_bytes = bt * C * tt * itemsize
    vmem_limit = _derive_vmem_limit(block_bytes, weights_bytes)

    # Pass 1: streamed squeeze reduction over T + excite MLP on the last step.
    excite = pl.pallas_call(
        functools.partial(_excite_kernel, seq_len=T, t_tile=tt,
                          mask_tail=mask_tail),
        out_shape=jax.ShapeDtypeStruct((B, C), jnp.float32),
        grid=(nb, nt),
        in_specs=[
            pl.BlockSpec((bt, C, tt), lambda b, t: (b, 0, t)),
            pl.BlockSpec((C, H), lambda b, t: (0, 0)),
            pl.BlockSpec((1, H), lambda b, t: (0, 0)),
            pl.BlockSpec((H, C), lambda b, t: (0, 0)),
            pl.BlockSpec((1, C), lambda b, t: (0, 0)),
        ],
        out_specs=pl.BlockSpec((bt, C), lambda b, t: (b, 0)),
        scratch_shapes=[pltpu.VMEM((bt, C), jnp.float32)],
        compiler_params=pltpu.CompilerParams(
            dimension_semantics=("parallel", "arbitrary"),
            vmem_limit_bytes=vmem_limit,
        ),
        cost_estimate=pl.CostEstimate(
            flops=int(2 * B * T * C + 4 * B * C * H),
            transcendentals=int(B * C),
            bytes_accessed=int(B * T * C * itemsize + weights_bytes + B * C * 4),
        ),
    )
    e = excite(x, w1, b1, w2, b2)

    # Pass 2: broadcast multiply, fully parallel stream.
    scale = pl.pallas_call(
        _scale_kernel,
        out_shape=jax.ShapeDtypeStruct((B, C, T), x.dtype),
        grid=(nb, nt),
        in_specs=[
            pl.BlockSpec((bt, C, tt), lambda b, t: (b, 0, t)),
            pl.BlockSpec((bt, C), lambda b, t: (b, 0)),
        ],
        out_specs=pl.BlockSpec((bt, C, tt), lambda b, t: (b, 0, t)),
        compiler_params=pltpu.CompilerParams(
            dimension_semantics=("parallel", "parallel"),
            vmem_limit_bytes=vmem_limit,
        ),
        cost_estimate=pl.CostEstimate(
            flops=int(B * T * C),
            transcendentals=0,
            bytes_accessed=int(2 * B * T * C * itemsize + B * C * 4),
        ),
    )
    return scale(x, e)


def squeeze_excite_block(x, w1, b1, w2, b2, *, max_fused_block_bytes=None):
    """Squeeze-Excite forward in PyTorch NCL layout: x (B, C, T) -> (B, C, T).

    Fuses squeeze + excite + scale into one pallas_call when a (Bt, C, T) slab
    fits VMEM (2x HBM bytes of x); otherwise falls back to a streamed two-pass
    version.  No layout transposes on either path.
    """
    B, C, T = x.shape
    H = w1.shape[1]
    itemsize = jnp.dtype(x.dtype).itemsize
    weights_bytes = (C * H + H + H * C + C) * 4

    budget = _vmem_budget_bytes()
    slab_cap = (budget - weights_bytes - (4 << 20)) // 4
    if max_fused_block_bytes is not None:
        slab_cap = min(slab_cap, max_fused_block_bytes)

    if C * T * itemsize <= slab_cap:
        return _fused_call(x, w1, b1, w2, b2, slab_cap, weights_bytes)
    return _two_pass_call(x, w1, b1, w2, b2, weights_bytes)


def init_params(key, channels):
    """Deterministic init matching nn.Linear shapes (weights pre-transposed)."""
    reduction_ratio = 16
    hidden = channels // reduction_ratio
    k1, k2, k3, k4 = jax.random.split(key, 4)
    # PyTorch nn.Linear default: U(-1/sqrt(fan_in), 1/sqrt(fan_in))
    bound1 = 1.0 / jnp.sqrt(channels)
    bound2 = 1.0 / jnp.sqrt(hidden)
    w1 = jax.random.uniform(k1, (channels, hidden), jnp.float32, -bound1, bound1)
    b1 = jax.random.uniform(k2, (1, hidden), jnp.float32, -bound1, bound1)
    w2 = jax.random.uniform(k3, (hidden, channels), jnp.float32, -bound2, bound2)
    b2 = jax.random.uniform(k4, (1, channels), jnp.float32, -bound2, bound2)
    return w1, b1, w2, b2


if __name__ == "__main__":
    key = jax.random.PRNGKey(0)
    kx, kp = jax.random.split(key)

    batch, channels, seq_len = 2, 128, 16   # channels // 16 = 8 hidden units
    x = jax.random.normal(kx, (batch, channels, seq_len), jnp.float32)
    w1, b1, w2, b2 = init_params(kp, channels)

    # Pure-JAX reference of the same forward pass (NCL layout, as in PyTorch).
    squeeze = jnp.mean(x, axis=-1)
    h = jnp.maximum(squeeze @ w1 + b1, 0.0)
    e = jax.nn.sigmoid(h @ w2 + b2)
    ref = x * e[:, :, None]

    # Fused single-pass path (default for shapes that fit VMEM).
    out = jax.jit(squeeze_excite_block)(x, w1, b1, w2, b2)
    out = jax.block_until_ready(out)
    assert out.shape == x.shape
    assert jnp.allclose(out, ref, atol=1e-5, rtol=1e-5)

    # Streamed two-pass fallback path (forced by a zero fused-slab cap).
    out_fb = jax.jit(functools.partial(squeeze_excite_block,
                                       max_fused_block_bytes=0))(x, w1, b1, w2, b2)
    out_fb = jax.block_until_ready(out_fb)
    assert jnp.allclose(out_fb, ref, atol=1e-5, rtol=1e-5)

    print("KERNEL_OK")
</pallas_src>

<mosaic_0001>
module attributes {stable_mosaic.version = 11 : i64} {
  func.func @_fused_kernel(%arg0: i32, %arg1: memref<1x128x16xf32, #tpu.memory_space<vmem>>, %arg2: memref<128x8xf32, #tpu.memory_space<vmem>>, %arg3: memref<1x8xf32, #tpu.memory_space<vmem>>, %arg4: memref<8x128xf32, #tpu.memory_space<vmem>>, %arg5: memref<1x128xf32, #tpu.memory_space<vmem>>, %arg6: memref<1x128x16xf32, #tpu.memory_space<vmem>>) attributes {dimension_semantics = [#tpu.dimension_semantics<parallel>], iteration_bounds = array<i64: 2>, scalar_prefetch = 0 : i64, scratch_operands = 0 : i64, tpu.core_type = #tpu.core_type<tc>, window_params = [{transform_indices = @transform_0, window_bounds = array<i64: 1, 128, 16>}, {pipeline_mode = #tpu.pipeline_mode<synchronous>, transform_indices = @transform_1, window_bounds = array<i64: 128, 8>}, {pipeline_mode = #tpu.pipeline_mode<synchronous>, transform_indices = @transform_2, window_bounds = array<i64: 1, 8>}, {pipeline_mode = #tpu.pipeline_mode<synchronous>, transform_indices = @transform_3, window_bounds = array<i64: 8, 128>}, {pipeline_mode = #tpu.pipeline_mode<synchronous>, transform_indices = @transform_4, window_bounds = array<i64: 1, 128>}, {transform_indices = @transform_5, window_bounds = array<i64: 1, 128, 16>}]} {
    %c0 = arith.constant 0 : index
    %c0_0 = arith.constant 0 : index
    %c0_1 = arith.constant 0 : index
    %0 = vector.load %arg1[%c0, %c0_0, %c0_1] : memref<1x128x16xf32, #tpu.memory_space<vmem>>, vector<1x128x16xf32>
    %cst = arith.constant dense<0.000000e+00> : vector<1x128xf32>
    %1 = vector.multi_reduction <add>, %0, %cst [2] : vector<1x128x16xf32> to vector<1x128xf32>
    %cst_2 = arith.constant 6.250000e-02 : f32
    %2 = vector.broadcast %cst_2 : f32 to vector<1x128xf32>
    %3 = arith.mulf %1, %2 : vector<1x128xf32>
    %c0_3 = arith.constant 0 : index
    %c0_4 = arith.constant 0 : index
    %4 = vector.load %arg2[%c0_3, %c0_4] : memref<128x8xf32, #tpu.memory_space<vmem>>, vector<128x8xf32>
    %cst_5 = arith.constant dense<0.000000e+00> : vector<1x8xf32>
    %5 = tpu.matmul %3, %4, %cst_5 {dimension_numbers = #tpu.dot_dimension_numbers<[1], [0], [0], [1], [0, 0, 1, 1], [], []>} : vector<1x128xf32>, vector<128x8xf32>, vector<1x8xf32> -> vector<1x8xf32>
    %c0_6 = arith.constant 0 : index
    %c0_7 = arith.constant 0 : index
    %6 = vector.load %arg3[%c0_6, %c0_7] : memref<1x8xf32, #tpu.memory_space<vmem>>, vector<1x8xf32>
    %7 = arith.addf %5, %6 : vector<1x8xf32>
    %cst_8 = arith.constant 0.000000e+00 : f32
    %8 = vector.broadcast %cst_8 : f32 to vector<1x8xf32>
    %9 = arith.maximumf %7, %8 : vector<1x8xf32>
    %c0_9 = arith.constant 0 : index
    %c0_10 = arith.constant 0 : index
    %10 = vector.load %arg4[%c0_9, %c0_10] : memref<8x128xf32, #tpu.memory_space<vmem>>, vector<8x128xf32>
    %cst_11 = arith.constant dense<0.000000e+00> : vector<1x128xf32>
    %11 = tpu.matmul %9, %10, %cst_11 {dimension_numbers = #tpu.dot_dimension_numbers<[1], [0], [0], [1], [0, 0, 1, 1], [], []>} : vector<1x8xf32>, vector<8x128xf32>, vector<1x128xf32> -> vector<1x128xf32>
    %c0_12 = arith.constant 0 : index
    %c0_13 = arith.constant 0 : index
    %12 = vector.load %arg5[%c0_12, %c0_13] : memref<1x128xf32, #tpu.memory_space<vmem>>, vector<1x128xf32>
    %13 = arith.addf %11, %12 : vector<1x128xf32>
    %14 = arith.negf %13 : vector<1x128xf32>
    %15 = math.exp %14 : vector<1x128xf32>
    %cst_14 = arith.constant 1.000000e+00 : f32
    %16 = vector.broadcast %cst_14 : f32 to vector<1x128xf32>
    %17 = arith.addf %16, %15 : vector<1x128xf32>
    %18 = arith.divf %16, %17 : vector<1x128xf32>
    %19 = vector.shape_cast %18 : vector<1x128xf32> to vector<1x128x1xf32>
    %20 = vector.broadcast %19 : vector<1x128x1xf32> to vector<1x128x16xf32>
    %21 = arith.mulf %0, %20 : vector<1x128x16xf32>
    %c0_15 = arith.constant 0 : index
    %c0_16 = arith.constant 0 : index
    %c0_17 = arith.constant 0 : index
    %22 = vector.load %arg6[%c0_15, %c0_16, %c0_17] : memref<1x128x16xf32, #tpu.memory_space<vmem>>, vector<1x128x16xf32>
    tpu.vector_store %arg6[%c0_15, %c0_16, %c0_17], %21 {strides = array<i32>} : memref<1x128x16xf32, #tpu.memory_space<vmem>>, vector<1x128x16xf32>,
    return
  }
  func.func @transform_0(%arg0: i32) -> (i32, i32, i32) {
    %c0_i32 = arith.constant 0 : i32
    %c0_i32_0 = arith.constant 0 : i32
    %c0_i32_1 = arith.constant 0 : i32
    return %arg0, %c0_i32, %c0_i32_0 : i32, i32, i32
  }
  func.func @transform_1(%arg0: i32) -> (i32, i32) {
    %c0_i32 = arith.constant 0 : i32
    %c0_i32_0 = arith.constant 0 : i32
    %c0_i32_1 = arith.constant 0 : i32
    return %c0_i32, %c0_i32_0 : i32, i32
  }
  func.func @transform_2(%arg0: i32) -> (i32, i32) {
    %c0_i32 = arith.constant 0 : i32
    %c0_i32_0 = arith.constant 0 : i32
    %c0_i32_1 = arith.constant 0 : i32
    return %c0_i32, %c0_i32_0 : i32, i32
  }
  func.func @transform_3(%arg0: i32) -> (i32, i32) {
    %c0_i32 = arith.constant 0 : i32
    %c0_i32_0 = arith.constant 0 : i32
    %c0_i32_1 = arith.constant 0 : i32
    return %c0_i32, %c0_i32_0 : i32, i32
  }
  func.func @transform_4(%arg0: i32) -> (i32, i32) {
    %c0_i32 = arith.constant 0 : i32
    %c0_i32_0 = arith.constant 0 : i32
    %c0_i32_1 = arith.constant 0 : i32
    return %c0_i32, %c0_i32_0 : i32, i32
  }
  func.func @transform_5(%arg0: i32) -> (i32, i32, i32) {
    %c0_i32 = arith.constant 0 : i32
    %c0_i32_0 = arith.constant 0 : i32
    %c0_i32_1 = arith.constant 0 : i32
    return %arg0, %c0_i32, %c0_i32_0 : i32, i32, i32
  }
}

</mosaic_0001>

<bundles_post_ra>
// kernel: squeeze_excite_block.1
= control target key start
LH: loop header
LB: loop body
LE: loop exit
PB: predicated region body
PF: predicated region fallthrough
CT: control target
= control target key end

     0   :  { %s886_s18 = smov 0   ;;  %s1155_s0 = inlined_call_operand.vmem [shape: f32[2,128,16], index: 0, kind: input, shape index: {}]   ;;  %s1156_s1 = inlined_call_operand.vmem [shape: f32[128,8], index: 1, kind: input, shape index: {}]   ;;  %s1157_s2 = inlined_call_operand.vmem [shape: f32[1,8], index: 2, kind: input, shape index: {}]   ;;  %s1158_s3 = inlined_call_operand.vmem [shape: f32[8,128], index: 3, kind: input, shape index: {}]   ;;  %s1159_s4 = inlined_call_operand.vmem [shape: f32[1,128], index: 4, kind: input, shape index: {}]   ;;  %s1160_s5 = inlined_call_operand.vmem [shape: f32[2,128,16], index: 5, kind: output, shape index: {}]  }
   0x1 LB: > { %s758_s19 = sadd.s32 4294967295, %s852_s18   ;;  %p762_p0 = scmp.ge.s32.totalorder %s852_s18, 1  ;;  %s852_s18 = sphi %s886_s18, %s15_s18  }
   0x2   : > { %p187_p1 = scmp.lt.s32.totalorder %s852_s18, 3 }
   0x4   : > { %p188_p2 = pnand %p762_p0, %p187_p1 }
   0x5   : > { %p215_p3 = scmp.lt.s32.totalorder (!%p188_p2), %s758_s19, 1 }
   0x6   : > { %191 = sbr.rel (%p188_p2) target bundleno = 764 (0x2fc), region = 40 }
   0xb   : > { %s1162_s19 = smov (!%p215_p3, %s758_s19), 1  ;;  %vm241_vm0 = vcmask 130048   ;;  %v321_v18 = vld [vmem:[%s1156_s1 + $0x78] sm:$0xff]  ;;  %v854_v21 = vmov 0.0   ;;  %v320_v24 = vld [vmem:[%s1156_s1 + $0x70] sm:$0xff]  ;;  %v319_v25 = vld [vmem:[%s1156_s1 + $0x68] sm:$0xff]  ;;  %v339_v49 = vlaneseq }
   0xc   : > { %s771_s20 = sshll.u32 %s1162_s19, 7  ;;  %792 = vmatprep.subr.mxu0 %v854_v21  ;;  %827 = vmatprep.subr.mxu1 %v854_v21  ;;  %v318_v30 = vld [vmem:[%s1156_s1 + $0x60] sm:$0xff]  ;;  %v317_v35 = vld [vmem:[%s1156_s1 + $0x58] sm:$0xff]  ;;  %v316_v36 = vld [vmem:[%s1156_s1 + $0x50] sm:$0xff]  ;;  %vm855_vm1 = vmmov 0   ;;  %vm350_vm2 = vcmask 130112  }
   0xd   : > { %s902_s23 = scalar_lea.vmem %s1155_s0, %s771_s20  ;;  %793 = vmatpush3.msra.mxu0 %v321_v18  ;;  %v315_v39 = vld [vmem:[%s1156_s1 + $0x48] sm:$0xff]  ;;  %v314_v40 = vld [vmem:[%s1156_s1 + $0x40] sm:$0xff]  ;;  %v313_v41 = vld [vmem:[%s1156_s1 + $0x38] sm:$0xff]  ;;  %824 = vmatprep.mubr.msk.f32.mxu0 %vm855_vm1, %v854_v21  ;;  %v1051_v50 = vand.u32 127, %v339_v49  ;;  %v1053_v51 = vshrl.u32 %v339_v49, 7  ;;  %vm357_vm3 = vcmask 195712   ;;  %s1102_s17 = scalar_lea.vmem %s1160_s5, %s771_s20 }
   0xe   : > { %v905_v0 = vld [vmem:[%s902_s23] sm:$0xff]  ;;  %v908_v1 = vld [vmem:[%s902_s23 + $0x10] sm:$0xff]  ;;  %v911_v2 = vld [vmem:[%s902_s23 + $0x8] sm:$0xff]  ;;  %794 = vmatprep.subr.mxu0 %v854_v21  ;;  %829 = vmatprep.mubr.msk.f32.mxu1 %vm855_vm1, %v854_v21  ;;  %vm364_vm4 = vcmask 261312   ;;  %vm371_vm5 = vcmask 326912   ;;  %vm378_vm6 = vcmask 392512  }
   0xf   : > { %v242_v3 = vsel %vm241_vm0, %v905_v0, 0.0  ;;  %v248_v4 = vsel %vm241_vm0, %v908_v1, 0.0  ;;  %v918_v5 = vld [vmem:[%s902_s23 + $0x18] sm:$0xff]  ;;  %v245_v6 = vsel %vm241_vm0, %v911_v2, 0.0  ;;  %v925_v8 = vld [vmem:[%s902_s23 + $0x20] sm:$0xff]  ;;  %v928_v9 = vld [vmem:[%s902_s23 + $0x28] sm:$0xff]  ;;  %795 = vmatpush3.msra.mxu0 %v320_v24  ;;  %v343_v58 = vsub.s32 %v1051_v50, %v1053_v51 }
  0x10   : > { %243 = vadd.xlane.f32.xlu0 %v242_v3  ;;  %249 = vadd.xlane.f32.xlu1 %v248_v4  ;;  %v251_v7 = vsel %vm241_vm0, %v918_v5, 0.0  ;;  %v254_v10 = vsel %vm241_vm0, %v925_v8, 0.0  ;;  %v257_v11 = vsel %vm241_vm0, %v928_v9, 0.0  ;;  %v935_v12 = vld [vmem:[%s902_s23 + $0x30] sm:$0xff]  ;;  %v938_v13 = vld [vmem:[%s902_s23 + $0x38] sm:$0xff]  ;;  %v945_v16 = vld [vmem:[%s902_s23 + $0x40] sm:$0xff] }
  0x11   : > { %v260_v14 = vsel %vm241_vm0, %v935_v12, 0.0  ;;  %v263_v15 = vsel %vm241_vm0, %v938_v13, 0.0  ;;  %v948_v17 = vld [vmem:[%s902_s23 + $0x48] sm:$0xff]  ;;  %v266_v19 = vsel %vm241_vm0, %v945_v16, 0.0  ;;  %v960_v22 = vld [vmem:[%s902_s23 + $0x50] sm:$0xff]  ;;  %v963_v23 = vld [vmem:[%s902_s23 + $0x58] sm:$0xff]  ;;  %796 = vmatprep.subr.mxu0 %v854_v21 }
  0x12   : > { %v269_v20 = vsel %vm241_vm0, %v948_v17, 0.0  ;;  %v272_v26 = vsel %vm241_vm0, %v960_v22, 0.0  ;;  %v275_v27 = vsel %vm241_vm0, %v963_v23, 0.0  ;;  %v977_v28 = vld [vmem:[%s902_s23 + $0x60] sm:$0xff]  ;;  %v980_v29 = vld [vmem:[%s902_s23 + $0x68] sm:$0xff]  ;;  %797 = vmatpush3.msra.mxu0 %v319_v25  ;;  %v992_v33 = vld [vmem:[%s902_s23 + $0x70] sm:$0xff] }
  0x13   : > { %v278_v31 = vsel %vm241_vm0, %v977_v28, 0.0  ;;  %v281_v32 = vsel %vm241_vm0, %v980_v29, 0.0  ;;  %798 = vmatprep.subr.mxu0 %v854_v21  ;;  %v995_v34 = vld [vmem:[%s902_s23 + $0x78] sm:$0xff]  ;;  %v284_v37 = vsel %vm241_vm0, %v992_v33, 0.0  ;;  %v312_v42 = vld [vmem:[%s1156_s1 + $0x30] sm:$0xff]  ;;  %v311_v43 = vld [vmem:[%s1156_s1 + $0x28] sm:$0xff] }
  0x14   : > { %246 = vadd.xlane.f32.xlu0 %v245_v6  ;;  %252 = vadd.xlane.f32.xlu1 %v251_v7  ;;  %v287_v38 = vsel %vm241_vm0, %v995_v34, 0.0  ;;  %v310_v44 = vld [vmem:[%s1156_s1 + $0x20] sm:$0xff]  ;;  %v309_v45 = vld [vmem:[%s1156_s1 + $0x18] sm:$0xff]  ;;  %v308_v46 = vld [vmem:[%s1156_s1 + $0x10] sm:$0xff]  ;;  %v345_v52 = vadd.s32 4294967288, %v1051_v50  ;;  %v359_v53 = vadd.s32 4294967272, %v1051_v50 }
  0x15   : > { %799 = vmatpush3.msra.mxu0 %v318_v30  ;;  %v307_v47 = vld [vmem:[%s1156_s1 + $0x8] sm:$0xff]  ;;  %v306_v48 = vld [vmem:[%s1156_s1] sm:$0xff]  ;;  %v352_v55 = vadd.s32 4294967280, %v1051_v50  ;;  %v366_v57 = vadd.s32 4294967264, %v1051_v50  ;;  %v373_v6 = vadd.s32 4294967256, %v1051_v50  ;;  %vm385_vm7 = vcmask 458112  }
  0x16   : > { %800 = vmatprep.subr.mxu0 %v854_v21  ;;  %v348_v60 = vsub.s32 %v345_v52, %v1053_v51  ;;  %v362_v61 = vsub.s32 %v359_v53, %v1053_v51  ;;  %v408_v49 = vadd.s32 4294967216, %v1051_v50  ;;  %vm392_vm8 = vcmask 523712  }
  0x17   : > { %801 = vmatpush3.msra.mxu0 %v317_v35  ;;  %v355_v62 = vsub.s32 %v352_v55, %v1053_v51  ;;  %v376_v24 = vsub.s32 %v373_v6, %v1053_v51  ;;  %vm399_vm9 = vcmask 589312   ;;  %vm406_vm10 = vcmask 654912  }
  0x18   : > { %255 = vadd.xlane.f32.xlu0 %v254_v10  ;;  %258 = vadd.xlane.f32.xlu1 %v257_v11  ;;  %v369_v11 = vsub.s32 %v366_v57, %v1053_v51  ;;  %v415_v57 = vadd.s32 4294967208, %v1051_v50  ;;  %vm413_vm11 = vcmask 720512   ;;  %vm420_vm12 = vcmask 786112  }
  0x19   : > { %802 = vmatprep.subr.mxu0 %v854_v21  ;;  %vm427_vm13 = vcmask 851712   ;;  %vm434_vm14 = vcmask 917312   ;;  %vm441_vm15 = vcmask 982912   ;;  %vm448_vm1 = vcmask 1048512  }
  0x1a   : > { %803 = vmatpush3.msra.mxu0 %v316_v36 }
  0x1b   : > { %804 = vmatprep.subr.mxu0 %v854_v21 }
  0x1c   : > { %261 = vadd.xlane.f32.xlu0 %v260_v14  ;;  %264 = vadd.xlane.f32.xlu1 %v263_v15 }
  0x1d   : > { %805 = vmatpush3.msra.mxu0 %v315_v39 }
  0x1e   : > { %806 = vmatprep.subr.mxu0 %v854_v21 }
  0x1f   : > { %807 = vmatpush3.msra.mxu0 %v314_v40 }
  0x20   : > { %267 = vadd.xlane.f32.xlu0 %v266_v19  ;;  %270 = vadd.xlane.f32.xlu1 %v269_v20  ;;  %v380_v19 = vadd.s32 4294967248, %v1051_v50 }
  0x21   : > { %808 = vmatprep.subr.mxu0 %v854_v21 }
  0x22   : > { %809 = vmatpush3.msra.mxu0 %v313_v41 }
  0x23   : > { %810 = vmatprep.subr.mxu0 %v854_v21 }
  0x24   : > { %273 = vadd.xlane.f32.xlu0 %v272_v26  ;;  %276 = vadd.xlane.f32.xlu1 %v275_v27  ;;  %v387_v26 = vadd.s32 4294967240, %v1051_v50 }
  0x25   : > { %811 = vmatpush3.msra.mxu0 %v312_v42 }
  0x26   : > { %812 = vmatprep.subr.mxu0 %v854_v21  ;;  %v390_v41 = vsub.s32 %v387_v26, %v1053_v51 }
  0x27   : > { %813 = vmatpush3.msra.mxu0 %v311_v43  ;;  %v401_v43 = vadd.s32 4294967224, %v1051_v50 }
  0x28   : > { %279 = vadd.xlane.f32.xlu0 %v278_v31  ;;  %282 = vadd.xlane.f32.xlu1 %v281_v32 }
  0x29   : > { %814 = vmatprep.subr.mxu0 %v854_v21  ;;  %v404_v55 = vsub.s32 %v401_v43, %v1053_v51 }
  0x2a   : > { %815 = vmatpush3.msra.mxu0 %v310_v44 }
  0x2b   : > { %816 = vmatprep.subr.mxu0 %v854_v21 }
  0x2c   : > { %285 = vadd.xlane.f32.xlu0 %v284_v37  ;;  %288 = vadd.xlane.f32.xlu1 %v287_v38  ;;  %v383_v37 = vsub.s32 %v380_v19, %v1053_v51  ;;  %v394_v38 = vadd.s32 4294967232, %v1051_v50 }
  0x2d   : > { %817 = vmatpush3.msra.mxu0 %v309_v45 }
  0x2e   : > { %818 = vmatprep.subr.mxu0 %v854_v21 }
  0x2f   : > { %819 = vmatpush3.msra.mxu0 %v308_v46 }
  0x30   : > { %820 = vmatprep.subr.mxu0 %v854_v21 }
  0x31   : > { %821 = vmatpush3.msra.mxu0 %v307_v47 }
  0x32   : > { %822 = vmatprep.subr.mxu0 %v854_v21 }
  0x33   : > { %823 = vmatpush3.msra.mxu0 %v306_v48  ;;  %v397_v48 = vsub.s32 %v394_v38, %v1053_v51 }
  0x99   : > { %v244_v54 = vpop.xlane.xlu0 %243  ;;  %v250_v56 = vpop.xlane.xlu1 %249 }
  0x9a   : > { %v290_v59 = vmul.f32 0.0625, %v244_v54  ;;  %v292_v63 = vmul.f32 0.0625, %v250_v56 }
  0x9c   : > { %v344_v14 = vrot.slane %v290_v59, %v343_v58  ;;  %v356_v20 = vrot.slane %v292_v63, %v355_v62  ;;  %v411_v62 = vsub.s32 %v408_v49, %v1053_v51  ;;  %v422_v63 = vadd.s32 4294967200, %v1051_v50 }
  0x9d   : > { %v247_v3 = vpop.xlane.xlu0 %246  ;;  %v253_v4 = vpop.xlane.xlu1 %252 }
  0x9e   : > { %v291_v7 = vmul.f32 0.0625, %v247_v3  ;;  %v293_v10 = vmul.f32 0.0625, %v253_v4 }
  0xa0   : > { %v349_v15 = vrot.slane %v291_v7, %v348_v60  ;;  %v363_v18 = vrot.slane %v293_v10, %v362_v61  ;;  %v418_v7 = vsub.s32 %v415_v57, %v1053_v51 }
  0xa1   : > { %v256_v21 = vpop.xlane.xlu0 %255  ;;  %v259_v25 = vpop.xlane.xlu1 %258 }
  0xa2   : > { %v351_v27 = vsel %vm350_vm2, %v349_v15, %v344_v14  ;;  %v294_v30 = vmul.f32 0.0625, %v256_v21  ;;  %v295_v31 = vmul.f32 0.0625, %v259_v25  ;;  %v436_v21 = vadd.s32 4294967184, %v1051_v50 }
  0xa3   : > { %v358_v32 = vsel %vm357_vm3, %v356_v20, %v351_v27  ;;  %v425_v20 = vsub.s32 %v422_v63, %v1053_v51  ;;  %vm524_vm2 = vcmask 64512  }
  0xa4   : > { %v365_v35 = vsel %vm364_vm4, %v363_v18, %v358_v32  ;;  %v370_v36 = vrot.slane %v294_v30, %v369_v11  ;;  %v377_v39 = vrot.slane %v295_v31, %v376_v24  ;;  %v429_v11 = vadd.s32 4294967192, %v1051_v50 }
  0xa5   : > { %v262_v40 = vpop.xlane.xlu0 %261  ;;  %v265_v42 = vpop.xlane.xlu1 %264  ;;  %v443_v24 = vadd.s32 4294967176, %v1051_v50  ;;  %v439_v38 = vsub.s32 %v436_v21, %v1053_v51 }
  0xa6   : > { %v372_v44 = vsel %vm371_vm5, %v370_v36, %v365_v35  ;;  %v296_v45 = vmul.f32 0.0625, %v262_v40  ;;  %v297_v46 = vmul.f32 0.0625, %v265_v42  ;;  %v432_v30 = vsub.s32 %v429_v11, %v1053_v51 }
  0xa7   : > { %v379_v52 = vsel %vm378_vm6, %v377_v39, %v372_v44  ;;  %v446_v39 = vsub.s32 %v443_v24, %v1053_v51 }
  0xa8   : > { %v384_v47 = vrot.slane %v296_v45, %v383_v37  ;;  %v391_v53 = vrot.slane %v297_v46, %v390_v41 }
  0xa9   : > { %v268_v54 = vpop.xlane.xlu0 %267  ;;  %v271_v56 = vpop.xlane.xlu1 %270 }
  0xaa   : > { %v386_v58 = vsel %vm385_vm7, %v384_v47, %v379_v52  ;;  %v298_v59 = vmul.f32 0.0625, %v268_v54  ;;  %v299_v60 = vmul.f32 0.0625, %v271_v56  ;;  %v322_v54 = vld [vmem:[%s1157_s2] sm:$0x1] }
  0xab   : > { %v393_v3 = vsel %vm392_vm8, %v391_v53, %v386_v58  ;;  %v522_v53 = vld [vmem:[%s1158_s3] sm:$0xff] }
  0xac   : > { %v398_v61 = vrot.slane %v298_v59, %v397_v48  ;;  %v405_v4 = vrot.slane %v299_v60, %v404_v55  ;;  %828 = vmatpush3.msra.mxu1 %v522_v53  ;;  %v523_v59 = vld [vmem:[%s1159_s4] sm:$0x1] }
  0xad   : > { %v274_v6 = vpop.xlane.xlu0 %273  ;;  %v277_v10 = vpop.xlane.xlu1 %276 }
  0xae   : > { %v400_v14 = vsel %vm399_vm9, %v398_v61, %v393_v3  ;;  %v300_v15 = vmul.f32 0.0625, %v274_v6  ;;  %v301_v18 = vmul.f32 0.0625, %v277_v10  ;;  %v606_v6 = vsub.s32 0, %v1053_v51 }
  0xaf   : > { %v407_v25 = vsel %vm406_vm10, %v405_v4, %v400_v14 }
  0xb0   : > { %v412_v19 = vrot.slane %v300_v15, %v411_v62  ;;  %v419_v26 = vrot.slane %v301_v18, %v418_v7 }
  0xb1   : > { %v280_v27 = vpop.xlane.xlu0 %279  ;;  %v283_v31 = vpop.xlane.xlu1 %282 }
  0xb2   : > { %v414_v32 = vsel %vm413_vm11, %v412_v19, %v407_v25  ;;  %v302_v35 = vmul.f32 0.0625, %v280_v27  ;;  %v303_v36 = vmul.f32 0.0625, %v283_v31 }
  0xb3   : > { %v421_v40 = vsel %vm420_vm12, %v419_v26, %v414_v32 }
  0xb4   : > { %v426_v37 = vrot.slane %v302_v35, %v425_v20  ;;  %v433_v41 = vrot.slane %v303_v36, %v432_v30 }
  0xb5   : > { %v286_v42 = vpop.xlane.xlu0 %285  ;;  %v289_v50 = vpop.xlane.xlu1 %288 }
  0xb6   : > { %v428_v43 = vsel %vm427_vm13, %v426_v37, %v421_v40  ;;  %v304_v44 = vmul.f32 0.0625, %v286_v42  ;;  %v305_v45 = vmul.f32 0.0625, %v289_v50 }
  0xb7   : > { %v435_v48 = vsel %vm434_vm14, %v433_v41, %v428_v43 }
  0xb8   : > { %v440_v46 = vrot.slane %v304_v44, %v439_v38  ;;  %v447_v47 = vrot.slane %v305_v45, %v446_v39 }
  0xba   : > { %v442_v49 = vsel %vm441_vm15, %v440_v46, %v435_v48 }
  0xbb   : > { %v449_v52 = vsel %vm448_vm1, %v447_v47, %v442_v49 }
  0xbc   : > { %825 = vmatmul.mubr.f32.vlgmr.msra.gmra.mxu0 %v449_v52 }
 0x17c   : > { %v517_v55 = vpop.f32.mrf.mxu0 }
 0x17d   : > { %v518_v56 = vadd.f32 %v517_v55, %v322_v54 }
 0x17e   : > { %v826_v57 = vpop.f32.mrf.mxu0 }
 0x17f   : > { %v521_v58 = vmax.f32 %v518_v56, 0.0 }
 0x181   : > { %830 = vmatmul.mubr.msk.f32.vlgmr.msra.gmra.mxu1 %vm524_vm2, %v521_v58 }
 0x241   : > { %v594_v60 = vpop.f32.mrf.mxu1 }
 0x242   : > { %v595_v61 = vadd.f32 %v594_v60, %v523_v59 }
 0x243   : > { %v831_v62 = vpop.f32.mrf.mxu1 }
 0x244   : > { %v768_v63 = vmul.f32 -1.442695, %v595_v61 }
 0x246   : > { %842 = vpow2.f32 %v768_v63 }
 0x253   : > { %v843_v3 = vpop.eup %842 }
 0x254   : > { %v601_v4 = vadd.f32 1.0, %v843_v3 }
 0x256   : > { %844 = vrcp.f32 %v601_v4 }
 0x263   : > { %v845_v7 = vpop.eup %844 }
 0x264   : > { %v607_v10 = vrot.slane %v845_v7, %v606_v6 }
 0x266   : > { %613 = vbcast.lane.b32.xlu1 %v607_v10, 264  ;;  %609 = vbcast.lane.b32.xlu0 %v607_v10, 256 }
 0x26a   : > { %617 = vbcast.lane.b32.xlu1 %v607_v10, 272  ;;  %625 = vbcast.lane.b32.xlu0 %v607_v10, 288 }
 0x26e   : > { %621 = vbcast.lane.b32.xlu1 %v607_v10, 280  ;;  %633 = vbcast.lane.b32.xlu0 %v607_v10, 304 }
 0x272   : > { %629 = vbcast.lane.b32.xlu1 %v607_v10, 296  ;;  %641 = vbcast.lane.b32.xlu0 %v607_v10, 320 }
 0x276   : > { %637 = vbcast.lane.b32.xlu1 %v607_v10, 312  ;;  %649 = vbcast.lane.b32.xlu0 %v607_v10, 336 }
 0x27a   : > { %645 = vbcast.lane.b32.xlu1 %v607_v10, 328  ;;  %657 = vbcast.lane.b32.xlu0 %v607_v10, 352 }
 0x27e   : > { %653 = vbcast.lane.b32.xlu1 %v607_v10, 344  ;;  %665 = vbcast.lane.b32.xlu0 %v607_v10, 368 }
 0x282   : > { %661 = vbcast.lane.b32.xlu1 %v607_v10, 360 }
 0x286   : > { %669 = vbcast.lane.b32.xlu1 %v607_v10, 376 }
 0x2d8   : > { %v614_v51 = vpop.permute.xlu1 %613  ;;  %v610_v11 = vpop.permute.xlu0 %609 }
 0x2d9   : > { %v672_v14 = vmul.f32 %v614_v51, %v911_v2  ;;  %v671_v15 = vmul.f32 %v610_v11, %v905_v0 }
 0x2db   : > { %688 = vst.msk [vmem:[%s1102_s17 + $0x8] sm:$0xff] %vm241_vm0, %v672_v14  ;;  %687 = vst.msk [vmem:[%s1102_s17] sm:$0xff] %vm241_vm0, %v671_v15 }
 0x2dc   : > { %v618_v18 = vpop.permute.xlu1 %617  ;;  %v626_v19 = vpop.permute.xlu0 %625 }
 0x2dd   : > { %v673_v20 = vmul.f32 %v618_v18, %v908_v1  ;;  %v675_v21 = vmul.f32 %v626_v19, %v925_v8 }
 0x2df   : > { %689 = vst.msk [vmem:[%s1102_s17 + $0x10] sm:$0xff] %vm241_vm0, %v673_v20  ;;  %691 = vst.msk [vmem:[%s1102_s17 + $0x20] sm:$0xff] %vm241_vm0, %v675_v21 }
 0x2e0   : > { %v622_v24 = vpop.permute.xlu1 %621  ;;  %v634_v2 = vpop.permute.xlu0 %633 }
 0x2e1   : > { %v674_v0 = vmul.f32 %v622_v24, %v918_v5  ;;  %v677_v25 = vmul.f32 %v634_v2, %v935_v12 }
 0x2e3   : > { %690 = vst.msk [vmem:[%s1102_s17 + $0x18] sm:$0xff] %vm241_vm0, %v674_v0  ;;  %693 = vst.msk [vmem:[%s1102_s17 + $0x30] sm:$0xff] %vm241_vm0, %v677_v25 }
 0x2e4   : > { %v630_v26 = vpop.permute.xlu1 %629  ;;  %v642_v1 = vpop.permute.xlu0 %641 }
 0x2e5   : > { %v676_v8 = vmul.f32 %v630_v26, %v928_v9  ;;  %v679_v27 = vmul.f32 %v642_v1, %v945_v16 }
 0x2e7   : > { %692 = vst.msk [vmem:[%s1102_s17 + $0x28] sm:$0xff] %vm241_vm0, %v676_v8  ;;  %695 = vst.msk [vmem:[%s1102_s17 + $0x40] sm:$0xff] %vm241_vm0, %v679_v27 }
 0x2e8   : > { %v638_v30 = vpop.permute.xlu1 %637  ;;  %v650_v5 = vpop.permute.xlu0 %649 }
 0x2e9   : > { %v678_v12 = vmul.f32 %v638_v30, %v938_v13  ;;  %v681_v31 = vmul.f32 %v650_v5, %v960_v22 }
 0x2eb   : > { %694 = vst.msk [vmem:[%s1102_s17 + $0x38] sm:$0xff] %vm241_vm0, %v678_v12  ;;  %697 = vst.msk [vmem:[%s1102_s17 + $0x50] sm:$0xff] %vm241_vm0, %v681_v31 }
 0x2ec   : > { %v646_v9 = vpop.permute.xlu1 %645  ;;  %v658_v32 = vpop.permute.xlu0 %657 }
 0x2ed   : > { %v680_v16 = vmul.f32 %v646_v9, %v948_v17  ;;  %v683_v35 = vmul.f32 %v658_v32, %v977_v28 }
 0x2ef   : > { %696 = vst.msk [vmem:[%s1102_s17 + $0x48] sm:$0xff] %vm241_vm0, %v680_v16  ;;  %699 = vst.msk [vmem:[%s1102_s17 + $0x60] sm:$0xff] %vm241_vm0, %v683_v35 }
 0x2f0   : > { %v654_v36 = vpop.permute.xlu1 %653  ;;  %v666_v13 = vpop.permute.xlu0 %665 }
 0x2f1   : > { %v682_v22 = vmul.f32 %v654_v36, %v963_v23  ;;  %v685_v37 = vmul.f32 %v666_v13, %v992_v33 }
 0x2f3   : > { %698 = vst.msk [vmem:[%s1102_s17 + $0x58] sm:$0xff] %vm241_vm0, %v682_v22  ;;  %701 = vst.msk [vmem:[%s1102_s17 + $0x70] sm:$0xff] %vm241_vm0, %v685_v37 }
 0x2f4   : > { %v662_v38 = vpop.permute.xlu1 %661 }
 0x2f5   : > { %v684_v39 = vmul.f32 %v662_v38, %v980_v29 }
 0x2f7   : > { %700 = vst.msk [vmem:[%s1102_s17 + $0x68] sm:$0xff] %vm241_vm0, %v684_v39 }
 0x2f8   : > { %v670_v17 = vpop.permute.xlu1 %669 }
 0x2f9   : > { %v686_v28 = vmul.f32 %v670_v17, %v995_v34 }
 0x2fb   : > { %702 = vst.msk [vmem:[%s1102_s17 + $0x78] sm:$0xff] %vm241_vm0, %v686_v28 }
 0x2fc PF: > { %s15_s18 = sadd.s32 1, %s852_s18  }
 0x2fd   : > { %p12_p4 = scmp.ge.s32.totalorder %s15_s18, 4  }
 0x2ff   :  { %14 = sbr.rel (!%p12_p4) target bundleno = 1 (0x1), region = 70 }

</bundles_post_ra>
